<compile_context>
chip_gen: v6e
topology: v6e:2x2x1
jax: 0.10.0
libtpu: 0.0.40
codegen_flags: <defaults>
</compile_context>

<pallas_src>
import functools

import jax
import jax.numpy as jnp
from jax.experimental import pallas as pl
from jax.experimental.pallas import tpu as pltpu


def _round_up(x, m):
    return (x + m - 1) // m * m


def _conv3x3_bn_relu_kernel(x_ref, w_ref, bias_ref, o_ref, *, tile_rows,
                            sub_rows, shifts):
    """One grid step = one (image, row-chunk) tile.

    x_ref    : (1, r_slab, K)          bf16  row-flattened padded image
                                             (K = Cin, or 3*Cin when dw-packed)
    w_ref    : (n_taps, K, Cout_pad)   bf16  BN-scale-folded conv weights
    bias_ref : (1, Cout_pad)           f32   folded BN bias
    o_ref    : (1, tile_rows, Cout_pad) bf16 output chunk
    """
    chunk = pl.program_id(1)
    n_sub = tile_rows // sub_rows
    for s in range(n_sub):                       # static unroll (small)
        base = chunk * tile_rows + s * sub_rows  # multiple of 8 by construction
        acc = None
        for t, shift in enumerate(shifts):       # 3 (packed) or 9 taps
            start = base + shift
            if shift % 8 == 0:
                start = pl.multiple_of(start, 8)
            lhs = x_ref[0, pl.ds(start, sub_rows), :]          # (sub_rows, K)
            tap = jnp.dot(lhs, w_ref[t], preferred_element_type=jnp.float32)
            acc = tap if acc is None else acc + tap            # vreg f32 acc
        y = jnp.maximum(acc + bias_ref[...], 0.0)              # BN bias + ReLU
        o_ref[0, s * sub_rows:(s + 1) * sub_rows, :] = y.astype(o_ref.dtype)


def conv3x3_bn_relu(x_nchw, weight, bn_gamma, bn_beta, bn_mean, bn_var,
                    eps=1e-5, row_tile=128, sub_rows=64, pack_dw_max_cin=64):
    """x_nchw: (N, Cin, H, W); weight: (Cout, Cin, 3, 3) PyTorch OIHW layout.

    Returns bf16 NCHW output of conv3x3(s=1, p=1, bias=False) +
    BatchNorm2d(eval, running stats) + ReLU.

    `row_tile` = max output rows per grid step. Raise toward 512-1024 on
    v5e/v6e for large images (amortizes per-step overhead); keep modest on
    v7x / small batches so both TensorCores get several pipelined steps.
    """
    N, Cin, H, W = x_nchw.shape
    Cout = weight.shape[0]
    assert weight.shape == (Cout, Cin, 3, 3), "only 3x3 conv supported"

    Hp = H + 2
    Wp_al = _round_up(W + 2, 8)           # sublane-aligned padded width
    Cout_pad = _round_up(Cout, 128)       # lane-dense output channels

    # ---- fold eval-mode BN into weights (scale) + bias -------------------
    scale = (bn_gamma / jnp.sqrt(bn_var + eps)).astype(jnp.float32)
    bias = (bn_beta - bn_mean * scale).astype(jnp.float32)
    w_hwio = jnp.transpose(weight, (2, 3, 1, 0)).astype(jnp.float32)
    w_hwio = w_hwio * scale[None, None, None, :]              # (3,3,Cin,Cout)
    bias_p = jnp.zeros((1, Cout_pad), jnp.float32).at[0, :Cout].set(bias)

    # ---- NCHW -> NHWC bf16, zero-pad to (Hp, Wp_al), flatten rows ---------
    x = jnp.transpose(x_nchw, (0, 2, 3, 1)).astype(jnp.bfloat16)
    x = jnp.pad(x, ((0, 0), (1, 1), (1, Wp_al - W - 1), (0, 0)))
    x_flat = x.reshape(N, Hp * Wp_al, Cin)

    # ---- row tiling --------------------------------------------------------
    m_out = H * Wp_al                     # output rows the wrapper reads back
    sub_rows = max(8, (min(sub_rows, m_out) // 8) * 8)
    n_chunks = max(1, -(-m_out // row_tile))
    tile_rows = _round_up(-(-m_out // n_chunks), sub_rows)
    m_pad = n_chunks * tile_rows          # total rows the kernel writes

    # ---- tap layout --------------------------------------------------------
    pack_dw = Cin <= pack_dw_max_cin
    if pack_dw:
        # Pack the 3 horizontal (dw) taps into the channel axis: every
        # remaining tap shift is a multiple of Wp_al (8-aligned) and only 3
        # K=3*Cin matmuls are issued per sub-chunk.
        shifts = tuple(dh * Wp_al for dh in range(3))
        k_dim = 3 * Cin
        r_slab = m_pad + 2 * Wp_al
        pad_rows = max(0, r_slab + 2 - Hp * Wp_al)
        x_pad_flat = jnp.pad(x_flat, ((0, 0), (0, pad_rows), (0, 0)))
        x_in = jnp.concatenate(
            [x_pad_flat[:, dw:dw + r_slab, :] for dw in range(3)], axis=-1)
        w_k = w_hwio.reshape(3, k_dim, Cout)
    else:
        # TODO(synk): dw=1,2 shifts are sublane-misaligned on this large-Cin
        # path; pre-rotating the block once per step would remove the relayouts.
        shifts = tuple(dh * Wp_al + dw for dh in range(3) for dw in range(3))
        k_dim = Cin
        r_slab = m_pad + 2 * Wp_al + 2
        pad_rows = max(0, r_slab - Hp * Wp_al)
        x_in = jnp.pad(x_flat, ((0, 0), (0, pad_rows), (0, 0)))
        w_k = w_hwio.reshape(9, k_dim, Cout)

    w_in = (jnp.zeros((len(shifts), k_dim, Cout_pad), jnp.float32)
            .at[:, :, :Cout].set(w_k).astype(jnp.bfloat16))

    kernel = functools.partial(_conv3x3_bn_relu_kernel, tile_rows=tile_rows,
                               sub_rows=sub_rows, shifts=shifts)

    out = pl.pallas_call(
        kernel,
        out_shape=jax.ShapeDtypeStruct((N, m_pad, Cout_pad), jnp.bfloat16),
        grid_spec=pltpu.PrefetchScalarGridSpec(
            num_scalar_prefetch=0,
            grid=(N, n_chunks),
            in_specs=[
                # Whole padded image per batch element; constant over the
                # chunk axis, so it is only re-DMA'd when the batch index
                # changes.
                pl.BlockSpec((1, r_slab, k_dim), lambda n, c: (n, 0, 0)),
                pl.BlockSpec((len(shifts), k_dim, Cout_pad),
                             lambda n, c: (0, 0, 0)),
                pl.BlockSpec((1, Cout_pad), lambda n, c: (0, 0)),
            ],
            out_specs=pl.BlockSpec((1, tile_rows, Cout_pad),
                                   lambda n, c: (n, c, 0)),
        ),
        compiler_params=pltpu.CompilerParams(
            dimension_semantics=("parallel", "parallel"),
            # 48 MiB scoped VMEM: leaves headroom under v7x's 64 MiB physical
            # VMEM; raise toward ~100 MiB on v5e/v6e for large production tiles.
            vmem_limit_bytes=48 * 1024 * 1024,
        ),
    )(x_in, w_in, bias_p)

    # (N, m_pad, Cout_pad) -> (N, H, Wp_al, Cout_pad) -> valid crop -> NCHW.
    out = out[:, :m_out, :].reshape(N, H, Wp_al, Cout_pad)[:, :, :W, :Cout]
    return jnp.transpose(out, (0, 3, 1, 2))


if __name__ == "__main__":
    key = jax.random.PRNGKey(0)
    k_x, k_w = jax.random.split(key)

    N, Cin, Cout, H, W = 2, 4, 8, 16, 16

    x = jax.random.normal(k_x, (N, Cin, H, W), dtype=jnp.float32)
    # Deterministic conv weight init (Kaiming-like scale), PyTorch OIHW layout.
    fan_in = Cin * 3 * 3
    weight = jax.random.normal(k_w, (Cout, Cin, 3, 3),
                               dtype=jnp.float32) * (2.0 / fan_in) ** 0.5

    # BatchNorm2d default parameters (eval mode).
    bn_gamma = jnp.ones((Cout,), jnp.float32)
    bn_beta = jnp.zeros((Cout,), jnp.float32)
    bn_mean = jnp.zeros((Cout,), jnp.float32)
    bn_var = jnp.ones((Cout,), jnp.float32)

    out = conv3x3_bn_relu(x, weight, bn_gamma, bn_beta, bn_mean, bn_var)
    out = jax.block_until_ready(out)
    assert out.shape == (N, Cout, H, W)
    assert out.dtype == jnp.bfloat16

    # Reference on the same bf16-rounded inputs / BN-scale-folded weights,
    # f32 accumulation at highest precision; the kernel additionally rounds
    # its output to bf16 (~1 ulp), so use a tolerance covering that.
    scale = bn_gamma / jnp.sqrt(bn_var + 1e-5)
    bias = bn_beta - bn_mean * scale
    x_bf = x.astype(jnp.bfloat16).astype(jnp.float32)
    w_bf = (weight * scale[:, None, None, None]
            ).astype(jnp.bfloat16).astype(jnp.float32)
    ref = jax.lax.conv_general_dilated(
        x_bf, w_bf, window_strides=(1, 1), padding=((1, 1), (1, 1)),
        dimension_numbers=("NCHW", "OIHW", "NCHW"),
        precision=jax.lax.Precision.HIGHEST)
    ref = jnp.maximum(ref + bias[None, :, None, None], 0.0)

    err = float(jnp.max(jnp.abs(out.astype(jnp.float32) - ref)))
    assert err < 6e-2, f"max abs error {err}"
    print("KERNEL_OK")
</pallas_src>

<mosaic_0001>
module attributes {stable_mosaic.version = 11 : i64} {
  func.func @_conv3x3_bn_relu_kernel(%arg0: i32, %arg1: i32, %arg2: memref<1x432x12xbf16, #tpu.memory_space<vmem>>, %arg3: memref<3x12x128xbf16, #tpu.memory_space<vmem>>, %arg4: memref<1x128xf32, #tpu.memory_space<vmem>>, %arg5: memref<1x128x128xbf16, #tpu.memory_space<vmem>>) attributes {dimension_semantics = [#tpu.dimension_semantics<parallel>, #tpu.dimension_semantics<parallel>], iteration_bounds = array<i64: 2, 3>, scalar_prefetch = 0 : i64, scratch_operands = 0 : i64, tpu.core_type = #tpu.core_type<tc>, window_params = [{transform_indices = @transform_0, window_bounds = array<i64: 1, 432, 12>}, {pipeline_mode = #tpu.pipeline_mode<synchronous>, transform_indices = @transform_1, window_bounds = array<i64: 3, 12, 128>}, {pipeline_mode = #tpu.pipeline_mode<synchronous>, transform_indices = @transform_2, window_bounds = array<i64: 1, 128>}, {transform_indices = @transform_3, window_bounds = array<i64: 1, 128, 128>}]} {
    %c128_i32 = arith.constant 128 : i32
    %0 = arith.muli %arg1, %c128_i32 : i32
    %c0_i32 = arith.constant 0 : i32
    %1 = arith.addi %0, %c0_i32 : i32
    %c0_i32_0 = arith.constant 0 : i32
    %2 = arith.addi %1, %c0_i32_0 : i32
    %3 = tpu.assume_multiple %2, 8 : i32
    %c0 = arith.constant 0 : index
    %4 = arith.index_cast %3 : i32 to index
    %c0_1 = arith.constant 0 : index
    %5 = vector.load %arg2[%c0, %4, %c0_1] : memref<1x432x12xbf16, #tpu.memory_space<vmem>>, vector<1x64x12xbf16>
    %6 = vector.shape_cast %5 : vector<1x64x12xbf16> to vector<64x12xbf16>
    %c0_2 = arith.constant 0 : index
    %c0_3 = arith.constant 0 : index
    %c0_4 = arith.constant 0 : index
    %7 = vector.load %arg3[%c0_2, %c0_3, %c0_4] : memref<3x12x128xbf16, #tpu.memory_space<vmem>>, vector<1x12x128xbf16>
    %8 = vector.shape_cast %7 : vector<1x12x128xbf16> to vector<12x128xbf16>
    %cst = arith.constant dense<0.000000e+00> : vector<64x128xf32>
    %9 = tpu.matmul %6, %8, %cst {dimension_numbers = #tpu.dot_dimension_numbers<[1], [0], [0], [1], [0, 0, 1, 1], [], []>} : vector<64x12xbf16>, vector<12x128xbf16>, vector<64x128xf32> -> vector<64x128xf32>
    %c24_i32 = arith.constant 24 : i32
    %10 = arith.addi %1, %c24_i32 : i32
    %11 = tpu.assume_multiple %10, 8 : i32
    %c0_5 = arith.constant 0 : index
    %12 = arith.index_cast %11 : i32 to index
    %c0_6 = arith.constant 0 : index
    %13 = vector.load %arg2[%c0_5, %12, %c0_6] : memref<1x432x12xbf16, #tpu.memory_space<vmem>>, vector<1x64x12xbf16>
    %14 = vector.shape_cast %13 : vector<1x64x12xbf16> to vector<64x12xbf16>
    %c1 = arith.constant 1 : index
    %c0_7 = arith.constant 0 : index
    %c0_8 = arith.constant 0 : index
    %15 = vector.load %arg3[%c1, %c0_7, %c0_8] : memref<3x12x128xbf16, #tpu.memory_space<vmem>>, vector<1x12x128xbf16>
    %16 = vector.shape_cast %15 : vector<1x12x128xbf16> to vector<12x128xbf16>
    %cst_9 = arith.constant dense<0.000000e+00> : vector<64x128xf32>
    %17 = tpu.matmul %14, %16, %cst_9 {dimension_numbers = #tpu.dot_dimension_numbers<[1], [0], [0], [1], [0, 0, 1, 1], [], []>} : vector<64x12xbf16>, vector<12x128xbf16>, vector<64x128xf32> -> vector<64x128xf32>
    %18 = arith.addf %9, %17 : vector<64x128xf32>
    %c48_i32 = arith.constant 48 : i32
    %19 = arith.addi %1, %c48_i32 : i32
    %20 = tpu.assume_multiple %19, 8 : i32
    %c0_10 = arith.constant 0 : index
    %21 = arith.index_cast %20 : i32 to index
    %c0_11 = arith.constant 0 : index
    %22 = vector.load %arg2[%c0_10, %21, %c0_11] : memref<1x432x12xbf16, #tpu.memory_space<vmem>>, vector<1x64x12xbf16>
    %23 = vector.shape_cast %22 : vector<1x64x12xbf16> to vector<64x12xbf16>
    %c2 = arith.constant 2 : index
    %c0_12 = arith.constant 0 : index
    %c0_13 = arith.constant 0 : index
    %24 = vector.load %arg3[%c2, %c0_12, %c0_13] : memref<3x12x128xbf16, #tpu.memory_space<vmem>>, vector<1x12x128xbf16>
    %25 = vector.shape_cast %24 : vector<1x12x128xbf16> to vector<12x128xbf16>
    %cst_14 = arith.constant dense<0.000000e+00> : vector<64x128xf32>
    %26 = tpu.matmul %23, %25, %cst_14 {dimension_numbers = #tpu.dot_dimension_numbers<[1], [0], [0], [1], [0, 0, 1, 1], [], []>} : vector<64x12xbf16>, vector<12x128xbf16>, vector<64x128xf32> -> vector<64x128xf32>
    %27 = arith.addf %18, %26 : vector<64x128xf32>
    %c0_15 = arith.constant 0 : index
    %c0_16 = arith.constant 0 : index
    %28 = vector.load %arg4[%c0_15, %c0_16] : memref<1x128xf32, #tpu.memory_space<vmem>>, vector<1x128xf32>
    %29 = vector.broadcast %28 : vector<1x128xf32> to vector<64x128xf32>
    %30 = arith.addf %27, %29 : vector<64x128xf32>
    %cst_17 = arith.constant 0.000000e+00 : f32
    %31 = vector.broadcast %cst_17 : f32 to vector<64x128xf32>
    %32 = arith.maximumf %30, %31 : vector<64x128xf32>
    %33 = arith.truncf %32 : vector<64x128xf32> to vector<64x128xbf16>
    %c0_18 = arith.constant 0 : index
    %c0_19 = arith.constant 0 : index
    %c0_20 = arith.constant 0 : index
    %34 = vector.load %arg5[%c0_18, %c0_19, %c0_20] : memref<1x128x128xbf16, #tpu.memory_space<vmem>>, vector<1x64x128xbf16>
    %35 = vector.shape_cast %34 : vector<1x64x128xbf16> to vector<64x128xbf16>
    %36 = vector.shape_cast %33 : vector<64x128xbf16> to vector<1x64x128xbf16>
    tpu.vector_store %arg5[%c0_18, %c0_19, %c0_20], %36 {strides = array<i32>} : memref<1x128x128xbf16, #tpu.memory_space<vmem>>, vector<1x64x128xbf16>,
    %c128_i32_21 = arith.constant 128 : i32
    %37 = arith.muli %arg1, %c128_i32_21 : i32
    %c64_i32 = arith.constant 64 : i32
    %38 = arith.addi %37, %c64_i32 : i32
    %c0_i32_22 = arith.constant 0 : i32
    %39 = arith.addi %38, %c0_i32_22 : i32
    %40 = tpu.assume_multiple %39, 8 : i32
    %c0_23 = arith.constant 0 : index
    %41 = arith.index_cast %40 : i32 to index
    %c0_24 = arith.constant 0 : index
    %42 = vector.load %arg2[%c0_23, %41, %c0_24] : memref<1x432x12xbf16, #tpu.memory_space<vmem>>, vector<1x64x12xbf16>
    %43 = vector.shape_cast %42 : vector<1x64x12xbf16> to vector<64x12xbf16>
    %c0_25 = arith.constant 0 : index
    %c0_26 = arith.constant 0 : index
    %c0_27 = arith.constant 0 : index
    %44 = vector.load %arg3[%c0_25, %c0_26, %c0_27] : memref<3x12x128xbf16, #tpu.memory_space<vmem>>, vector<1x12x128xbf16>
    %45 = vector.shape_cast %44 : vector<1x12x128xbf16> to vector<12x128xbf16>
    %cst_28 = arith.constant dense<0.000000e+00> : vector<64x128xf32>
    %46 = tpu.matmul %43, %45, %cst_28 {dimension_numbers = #tpu.dot_dimension_numbers<[1], [0], [0], [1], [0, 0, 1, 1], [], []>} : vector<64x12xbf16>, vector<12x128xbf16>, vector<64x128xf32> -> vector<64x128xf32>
    %c24_i32_29 = arith.constant 24 : i32
    %47 = arith.addi %38, %c24_i32_29 : i32
    %48 = tpu.assume_multiple %47, 8 : i32
    %c0_30 = arith.constant 0 : index
    %49 = arith.index_cast %48 : i32 to index
    %c0_31 = arith.constant 0 : index
    %50 = vector.load %arg2[%c0_30, %49, %c0_31] : memref<1x432x12xbf16, #tpu.memory_space<vmem>>, vector<1x64x12xbf16>
    %51 = vector.shape_cast %50 : vector<1x64x12xbf16> to vector<64x12xbf16>
    %c1_32 = arith.constant 1 : index
    %c0_33 = arith.constant 0 : index
    %c0_34 = arith.constant 0 : index
    %52 = vector.load %arg3[%c1_32, %c0_33, %c0_34] : memref<3x12x128xbf16, #tpu.memory_space<vmem>>, vector<1x12x128xbf16>
    %53 = vector.shape_cast %52 : vector<1x12x128xbf16> to vector<12x128xbf16>
    %cst_35 = arith.constant dense<0.000000e+00> : vector<64x128xf32>
    %54 = tpu.matmul %51, %53, %cst_35 {dimension_numbers = #tpu.dot_dimension_numbers<[1], [0], [0], [1], [0, 0, 1, 1], [], []>} : vector<64x12xbf16>, vector<12x128xbf16>, vector<64x128xf32> -> vector<64x128xf32>
    %55 = arith.addf %46, %54 : vector<64x128xf32>
    %c48_i32_36 = arith.constant 48 : i32
    %56 = arith.addi %38, %c48_i32_36 : i32
    %57 = tpu.assume_multiple %56, 8 : i32
    %c0_37 = arith.constant 0 : index
    %58 = arith.index_cast %57 : i32 to index
    %c0_38 = arith.constant 0 : index
    %59 = vector.load %arg2[%c0_37, %58, %c0_38] : memref<1x432x12xbf16, #tpu.memory_space<vmem>>, vector<1x64x12xbf16>
    %60 = vector.shape_cast %59 : vector<1x64x12xbf16> to vector<64x12xbf16>
    %c2_39 = arith.constant 2 : index
    %c0_40 = arith.constant 0 : index
    %c0_41 = arith.constant 0 : index
    %61 = vector.load %arg3[%c2_39, %c0_40, %c0_41] : memref<3x12x128xbf16, #tpu.memory_space<vmem>>, vector<1x12x128xbf16>
    %62 = vector.shape_cast %61 : vector<1x12x128xbf16> to vector<12x128xbf16>
    %cst_42 = arith.constant dense<0.000000e+00> : vector<64x128xf32>
    %63 = tpu.matmul %60, %62, %cst_42 {dimension_numbers = #tpu.dot_dimension_numbers<[1], [0], [0], [1], [0, 0, 1, 1], [], []>} : vector<64x12xbf16>, vector<12x128xbf16>, vector<64x128xf32> -> vector<64x128xf32>
    %64 = arith.addf %55, %63 : vector<64x128xf32>
    %c0_43 = arith.constant 0 : index
    %c0_44 = arith.constant 0 : index
    %65 = vector.load %arg4[%c0_43, %c0_44] : memref<1x128xf32, #tpu.memory_space<vmem>>, vector<1x128xf32>
    %66 = vector.broadcast %65 : vector<1x128xf32> to vector<64x128xf32>
    %67 = arith.addf %64, %66 : vector<64x128xf32>
    %cst_45 = arith.constant 0.000000e+00 : f32
    %68 = vector.broadcast %cst_45 : f32 to vector<64x128xf32>
    %69 = arith.maximumf %67, %68 : vector<64x128xf32>
    %70 = arith.truncf %69 : vector<64x128xf32> to vector<64x128xbf16>
    %c0_46 = arith.constant 0 : index
    %c64 = arith.constant 64 : index
    %c0_47 = arith.constant 0 : index
    %71 = vector.load %arg5[%c0_46, %c64, %c0_47] : memref<1x128x128xbf16, #tpu.memory_space<vmem>>, vector<1x64x128xbf16>
    %72 = vector.shape_cast %71 : vector<1x64x128xbf16> to vector<64x128xbf16>
    %73 = vector.shape_cast %70 : vector<64x128xbf16> to vector<1x64x128xbf16>
    tpu.vector_store %arg5[%c0_46, %c64, %c0_47], %73 {strides = array<i32>} : memref<1x128x128xbf16, #tpu.memory_space<vmem>>, vector<1x64x128xbf16>,
    return
  }
  func.func @transform_0(%arg0: i32, %arg1: i32) -> (i32, i32, i32) {
    %c0_i32 = arith.constant 0 : i32
    %c0_i32_0 = arith.constant 0 : i32
    %c0_i32_1 = arith.constant 0 : i32
    return %arg0, %c0_i32, %c0_i32_0 : i32, i32, i32
  }
  func.func @transform_1(%arg0: i32, %arg1: i32) -> (i32, i32, i32) {
    %c0_i32 = arith.constant 0 : i32
    %c0_i32_0 = arith.constant 0 : i32
    %c0_i32_1 = arith.constant 0 : i32
    %c0_i32_2 = arith.constant 0 : i32
    return %c0_i32, %c0_i32_0, %c0_i32_1 : i32, i32, i32
  }
  func.func @transform_2(%arg0: i32, %arg1: i32) -> (i32, i32) {
    %c0_i32 = arith.constant 0 : i32
    %c0_i32_0 = arith.constant 0 : i32
    %c0_i32_1 = arith.constant 0 : i32
    return %c0_i32, %c0_i32_0 : i32, i32
  }
  func.func @transform_3(%arg0: i32, %arg1: i32) -> (i32, i32, i32) {
    %c0_i32 = arith.constant 0 : i32
    %c0_i32_0 = arith.constant 0 : i32
    return %arg0, %arg1, %c0_i32 : i32, i32, i32
  }
}

</mosaic_0001>

<bundles_post_ra>
// kernel: tpu_custom_call.1
= control target key start
LH: loop header
LB: loop body
LE: loop exit
PB: predicated region body
PF: predicated region fallthrough
CT: control target
= control target key end

     0   :  { %8 = vsyncpa [#allocation3], 0  ;;  %s1891_s0 = inlined_call_operand.vmem [shape: bf16[2,432,12], index: 0, kind: input, shape index: {}]   ;;  %s1892_s1 = inlined_call_operand.vmem [shape: bf16[3,12,128], index: 1, kind: input, shape index: {}]   ;;  %s1893_s2 = inlined_call_operand.vmem [shape: f32[1,128], index: 2, kind: input, shape index: {}]   ;;  %s1894_s3 = inlined_call_operand.hbm [shape: bf16[2,384,128], index: 3, kind: output, shape index: {}]  }
   0x1   :  { %10 = vsyncpa [#allocation3 + $0x1], 0  ;;  %s1635_s12 = smov 0   ;;  %s1637_s13 = smov 0  }
   0x2   :  { %s1639_s14 = smov 0   ;;  %s1641_s15 = smov 0  }
   0x3   :  { %s1643_s16 = smov 0   ;;  %s1645_s17 = smov 0  }
   0x4   :  { %s1647_s18 = smov 0   ;;  %s1649_s19 = smov 0  }
   0x5 LB: > { %s1155_s20 = sadd.s32 4294967295, %s1610_s19   ;;  %s1156_s21 = sadd.s32 4294967294, %s1610_s19   ;;  %s1610_s19 = sphi %s1649_s19, %s16_s19   ;;  %s1606_s18 = sphi %s1647_s18, %s1906_s18   ;;  %s1602_s17 = sphi %s1645_s17, %s1905_s17   ;;  %s1598_s16 = sphi %s1643_s16, %s1904_s16   ;;  %s1594_s15 = sphi %s1641_s15, %s1903_s15   ;;  %s1590_s14 = sphi %s1639_s14, %s1902_s14   ;;  %s1586_s13 = sphi %s1637_s13, %s1901_s13   ;;  %s1582_s12 = sphi %s1635_s12, %s1900_s12  }
   0x6   : > { %s25_s22 = sadd.s32 1, %s1602_s17  ;;  %s28_s23 = sadd.s32 1, %s1606_s18 }
   0x7   : > { %p26_p0 = scmp.ge.s32.totalorder %s25_s22, 3  ;;  %p115_p1 = scmp.ne.s32.totalorder %s1590_s14, %s1586_s13 }
   0x8   : > { %p116_p2 = scmp.eq.s32.totalorder %s1155_s20, 5  ;;  %p121_p5 = scmp.ne.s32.totalorder %s1586_s13, %s1582_s12 }
   0x9   : > { %s1908_s22 = smov (%p26_p0, %s25_s22), 0  ;;  %s1910_s23 = smov (!%p26_p0, %s28_s23), %s1606_s18 }
   0xa   : > { %s101_s24 = ssub.s32 %s1602_s17, %s1908_s22  ;;  %p1686_p3 = por %p116_p2, %p115_p1 }
   0xb   : > { %p30_p4 = scmp.ge.s32.totalorder %s1910_s23, 2  ;;  %p122_p6 = scmp.eq.s32.totalorder %s1156_s21, 5 }
   0xc   : > { %p1159_p7 = scmp.ge.s32.totalorder %s1610_s19, 1  ;;  %p154_p9 = scmp.lt.s32.totalorder %s1610_s19, 7 }
   0xd   : > { %s1912_s23 = smov (%p30_p4, %s1910_s23), 0  ;;  %p1695_p8 = por %p122_p6, %p121_p5 }
   0xe   : > { %1897 = sst [smem:[#allocation5_spill]] %s1912_s23  ;;  %s100_s27 = ssub.s32 %s1606_s18, %s1912_s23 }
   0xf   : > { %s105_s28 = sadd.s32 1, %s1590_s14  ;;  %s102_s29 = sor.u32 %s101_s24, %s100_s27 }
  0x10   : > { %p155_p10 = pnand %p1159_p7, %p154_p9  ;;  %p103_p11 = scmp.eq.s32.totalorder %s102_s29, 0 }
  0x11   : > { %p178_p12 = scmp.lt.s32.totalorder (!%p155_p10), %s1598_s16, 1  ;;  %s1716_s8 = sshll.u32 (!%p155_p10), %s1594_s15, 7 }
  0x12   : > { %s1704_s30 = scalar_select %p103_p11, %s1590_s14, %s105_s28  }
  0x13   : > { %158 = sbr.rel (%p155_p10) target bundleno = 295 (0x127), region = 32  ;;  %s200_s10 = sadd.s32 (!%p155_p10), 24, %s1716_s8 }
  0x14   : > { %s186_s11 = sshra.s32 (!%p155_p10), %s1716_s8, 3  ;;  %s201_s27 = sshra.s32 (!%p155_p10), %s200_s10, 3 }
  0x15   : > { %s1164_s28 = sshll.u32 (!%p155_p10), %s201_s27, 2  ;;  %s1163_s29 = sshll.u32 (!%p155_p10), %s186_s11, 2 }
  0x16   : > { %s428_s20 = sadd.s32 (!%p155_p10), 48, %s1716_s8  ;;  %s620_s6 = sadd.s32 (!%p155_p10), 64, %s1716_s8 }
  0x17   : > { %s429_s10 = sshra.s32 (!%p155_p10), %s428_s20, 3  ;;  %s621_s20 = sshra.s32 (!%p155_p10), %s620_s6, 3 }
  0x18   : > { %v1488_v0 = vld [vmem:[%s1892_s1 + $0x8] sm:$0x3f]   ;;  %vm254_vm0 = vcmask 1045504   ;;  %v1489_v2 = vld [vmem:[%s1892_s1] sm:$0x3f]   ;;  %s179_s9 = scalar_select %p178_p12, %s1598_s16, 1 }
  0x19   : > { %1407 = vmatprep.subr.msk.bf16.mxu0 %vm254_vm0, %v1488_v0  ;;  %v256_v1 = vsel %vm254_vm0, %v1488_v0, 0  ;;  %1408 = vmatprep.subr.msk.bf16.mxu1 %vm254_vm0, %v1489_v2  ;;  %v361_v3 = vsel %vm254_vm0, %v1489_v2, 0  ;;  %v1492_v4 = vld [vmem:[%s1892_s1 + $0x10] sm:$0x3f]   ;;  %v1495_v5 = vld [vmem:[%s1892_s1 + $0x8] sm:$0x3f]  }
  0x1a   : > { %1348 = vmatpush3.bf16.msra.mxu0 %v256_v1  ;;  %1358 = vmatpush3.bf16.msra.mxu1 %v361_v3  ;;  %s1413_s24 = smul.u32 216, %s179_s9  ;;  %vm241_vm1 = vcmask 97280   ;;  %v482_v6 = vsel %vm254_vm0, %v1492_v4, 0  ;;  %v688_v7 = vsel %vm254_vm0, %v1495_v5, 0  ;;  %s1185_s11 = sshll.u32 %s429_s10, 2 }
  0x1b   : > { %1409 = vmatprep.subr.msk.bf16.mxu0 %vm254_vm0, %v1492_v4  ;;  %1410 = vmatprep.subr.msk.bf16.mxu1 %vm254_vm0, %v1495_v5  ;;  %v1502_v10 = vld [vmem:[%s1892_s1] sm:$0x3f]   ;;  %s860_s10 = sadd.s32 112, %s1716_s8  ;;  %s1206_s27 = sshll.u32 %s621_s20, 2  ;;  %v1505_v19 = vld [vmem:[%s1892_s1 + $0x10] sm:$0x3f]  }
  0x1c   : > { %s1733_s23 = scalar_lea.vmem %s1891_s0, %s1413_s24  ;;  %s635_s24 = sadd.s32 88, %s1716_s8  ;;  %v793_v22 = vsel %vm254_vm0, %v1502_v10, 0  ;;  %v913_v24 = vsel %vm254_vm0, %v1505_v19, 0  ;;  %v1797_v57 = vld [vmem:[%s1893_s2] ss:$0 sm:$0xff] }
  0x1d   : > { %s204_s21 = scalar_lea.vmem %s1733_s23, %s1164_s28  ;;  %s189_s9 = scalar_lea.vmem %s1733_s23, %s1163_s29 }
  0x1e   : > { %v1490_v8 = vld [vmem:[%s204_s21] sm:$0xff]   ;;  %v1493_v11 = vld [vmem:[%s204_s21 + $0x8] sm:$0xff]   ;;  %s636_s28 = sshra.s32 %s635_s24, 3  ;;  %v1496_v13 = vld [vmem:[%s204_s21 + $0x10] sm:$0xff]   ;;  %s1751_s5 = scalar_lea.vmem %s1733_s23, %s1185_s11 }
  0x1f   : > { %v1491_v9 = vld [vmem:[%s189_s9] sm:$0xff]   ;;  %1349 = vmatprep.mubr.msk.bf16.mxu0 %vm241_vm1, %v1490_v8  ;;  %v1494_v12 = vld [vmem:[%s189_s9 + $0x8] sm:$0xff]   ;;  %s1207_s29 = sshll.u32 %s636_s28, 2  ;;  %v1497_v14 = vld [vmem:[%s189_s9 + $0x10] sm:$0xff]   ;;  %s861_s11 = sshra.s32 %s860_s10, 3 }
  0x20   : > { %1359 = vmatprep.mubr.msk.bf16.mxu1 %vm241_vm1, %v1491_v9  ;;  %1350 = vmatmul.mubr.msk.bf16.vlgmr.msra.gmra.mxu0 %vm241_vm1, %v1493_v11  ;;  %v1498_v15 = vld [vmem:[%s204_s21 + $0x18] sm:$0xff]   ;;  %s1756_s7 = scalar_lea.vmem %s1733_s23, %s1207_s29  ;;  %v1500_v17 = vld [vmem:[%s1751_s5] sm:$0xff]   ;;  %s624_s8 = scalar_lea.vmem %s1733_s23, %s1206_s27  ;;  %v1503_v20 = vld [vmem:[%s1751_s5 + $0x8] sm:$0xff]  }
  0x21   : > { %1360 = vmatmul.mubr.msk.bf16.vlgmr.msra.gmra.mxu1 %vm241_vm1, %v1494_v12  ;;  %1368 = vmatpush3.bf16.msra.mxu0 %v482_v6  ;;  %v1499_v16 = vld [vmem:[%s189_s9 + $0x18] sm:$0xff]   ;;  %v1501_v18 = vld [vmem:[%s1756_s7] sm:$0xff]   ;;  %s1228_s9 = sshll.u32 %s861_s11, 2  ;;  %v1504_v21 = vld [vmem:[%s1756_s7 + $0x8] sm:$0xff]   ;;  %s175_s29 = sand.u32 1, %s1586_s13  }
  0x22   : > { %1378 = vmatpush3.bf16.msra.mxu1 %v688_v7  ;;  %1353 = vmatprep.mubr.msk.bf16.mxu0 %vm241_vm1, %v1496_v13  ;;  %s864_s24 = scalar_lea.vmem %s1733_s23, %s1228_s9  ;;  %v1506_v23 = vld [vmem:[%s1751_s5 + $0x10] sm:$0xff]   ;;  %v1508_v26 = vld [vmem:[%s1751_s5 + $0x18] sm:$0xff]   ;;  %v1510_v28 = vld [vmem:[%s624_s8] sm:$0xff]   ;;  %s1160_s5 = sshll.u32 %s175_s29, 6 }
  0x23   : > { %1363 = vmatprep.mubr.msk.bf16.mxu1 %vm241_vm1, %v1497_v14  ;;  %1411 = vmatprep.subr.msk.bf16.mxu0 %vm254_vm0, %v1502_v10  ;;  %v1507_v25 = vld [vmem:[%s1756_s7 + $0x10] sm:$0xff]   ;;  %v1509_v27 = vld [vmem:[%s1756_s7 + $0x18] sm:$0xff]   ;;  %v1511_v29 = vld [vmem:[%s864_s24] sm:$0xff]   ;;  %s1806_s6 = scalar_lea.vmem [#allocation2], %s1160_s5  ;;  %s1414_s7 = smul.u32 48, %s1598_s16 }
  0x24   : > { %1412 = vmatprep.subr.msk.bf16.mxu1 %vm254_vm0, %v1505_v19  ;;  %v1512_v30 = vld [vmem:[%s624_s8 + $0x8] sm:$0xff]   ;;  %v1514_v32 = vld [vmem:[%s624_s8 + $0x10] sm:$0xff]   ;;  %v1516_v34 = vld [vmem:[%s624_s8 + $0x18] sm:$0xff]   ;;  %s1250_s20 = sshll.u32 %s1594_s15, 4  ;;  %s1067_s16 = sshll.u32 %s1806_s6, 4  ;;  %s1834_s16 = int_to_ptr.vmem [resolvable:$true] %s1067_s16 }
  0x25   : > { %v1513_v31 = vld [vmem:[%s864_s24 + $0x8] sm:$0xff]   ;;  %v1515_v33 = vld [vmem:[%s864_s24 + $0x10] sm:$0xff]   ;;  %v1517_v35 = vld [vmem:[%s864_s24 + $0x18] sm:$0xff]   ;;  %s1064_s10 = sadd.s32 %s1414_s7, %s1250_s20  ;;  %s1840_s4 = scalar_lea.sflag [#allocation3], %s175_s29 }
  0x26   : > { %s1251_s15 = sshll.u32 %s1064_s10, 6  ;;  %s1518_s9 = scalar_lea.vmem %s1834_s16, 1024 }
  0x27   : > { %s1832_s21 = scalar_lea.hbm %s1894_s3, %s1251_s15  ;;  %p1519_p13 = scmp.ne.s32.totalorder %s1834_s16, %s1518_s9 }
  0x28   : > { %1354 = vmatmul.mubr.msk.bf16.gmra.mxu0 %vm241_vm1, %v1498_v15  ;;  %s1612_s8 = smov [#allocation2]  }
  0x29   : > { %1364 = vmatmul.mubr.msk.bf16.gmra.mxu1 %vm241_vm1, %v1499_v16  ;;  %1369 = vmatprep.mubr.msk.bf16.mxu0 %vm241_vm1, %v1500_v17  ;;  %p1520_p0 = pnand %p1519_p13, %p1686_p3  ;;  %s1522_s24 = sshll.u32 %s1612_s8, 4  ;;  %s1523_s24 = int_to_ptr.vmem [resolvable:$false] %s1522_s24 }
  0x2a   : > { %1379 = vmatprep.mubr.msk.bf16.mxu1 %vm241_vm1, %v1501_v18  ;;  %s1524_s23 = scalar_lea.vmem %s1523_s24, 2048  ;;  %p1525_p2 = scmp.lt.s32.totalorder %s1834_s16, %s1523_s24 }
  0x2b   : > { %p1521_p1 = pneg %p1520_p0  ;;  %p1526_p4 = scmp.lt.s32.totalorder %s1524_s23, %s1518_s9 }
  0x2d   : > { %p1527_p5 = por %p1526_p4, %p1525_p2 }
  0x2f   : > { %p1528_p6 = pnand %p1527_p5, %p1521_p1 }
  0x30   : > { %1370 = vmatmul.mubr.msk.bf16.vlgmr.msra.gmra.mxu0 %vm241_vm1, %v1503_v20 }
  0x31   : > { %1380 = vmatmul.mubr.msk.bf16.vlgmr.msra.gmra.mxu1 %vm241_vm1, %v1504_v21  ;;  %1388 = vmatpush3.bf16.msra.mxu0 %v793_v22 }
  0x32   : > { %1398 = vmatpush3.bf16.msra.mxu1 %v913_v24  ;;  %1373 = vmatprep.mubr.msk.bf16.mxu0 %vm241_vm1, %v1506_v23 }
  0x33   : > { %1383 = vmatprep.mubr.msk.bf16.mxu1 %vm241_vm1, %v1507_v25 }
  0x38   : > { %1374 = vmatmul.mubr.msk.bf16.gmra.mxu0 %vm241_vm1, %v1508_v26 }
  0x39   : > { %1384 = vmatmul.mubr.msk.bf16.gmra.mxu1 %vm241_vm1, %v1509_v27  ;;  %1389 = vmatprep.mubr.msk.bf16.mxu0 %vm241_vm1, %v1510_v28 }
  0x3a   : > { %1399 = vmatprep.mubr.msk.bf16.mxu1 %vm241_vm1, %v1511_v29 }
  0x40   : > { %1390 = vmatmul.mubr.msk.bf16.vlgmr.msra.gmra.mxu0 %vm241_vm1, %v1512_v30 }
  0x41   : > { %1400 = vmatmul.mubr.msk.bf16.vlgmr.msra.gmra.mxu1 %vm241_vm1, %v1513_v31  ;;  %1393 = vmatprep.mubr.msk.bf16.mxu0 %vm241_vm1, %v1514_v32 }
  0x42   : > { %1403 = vmatprep.mubr.msk.bf16.mxu1 %vm241_vm1, %v1515_v33 }
  0x48   : > { %1394 = vmatmul.mubr.msk.bf16.gmra.mxu0 %vm241_vm1, %v1516_v34 }
  0x49   : > { %1404 = vmatmul.mubr.msk.bf16.gmra.mxu1 %vm241_vm1, %v1517_v35 }
  0xe0   : > { %v1351_v36 = vpop.f32.mrf.mxu0 }
  0xe1   : > { %v1361_v37 = vpop.f32.mrf.mxu1 }
  0xe2   : > { %v292_v38 = vpop.f32.mrf.mxu0  ;;  %v406_v51 = vadd.f32 %v1361_v37, %v1351_v36 }
  0xe3   : > { %v397_v39 = vpop.f32.mrf.mxu1 }
  0xe4   : > { %v1352_v40 = vpop.f32.mrf.mxu0  ;;  %v398_v54 = vadd.f32 %v397_v39, %v292_v38 }
  0xe5   : > { %v1362_v41 = vpop.f32.mrf.mxu1 }
  0xe6   : > { %v295_v42 = vpop.f32.mrf.mxu0  ;;  %v409_v59 = vadd.f32 %v1362_v41, %v1352_v40 }
  0xe7   : > { %v400_v43 = vpop.f32.mrf.mxu1 }
  0xe8   : > { %v1355_v44 = vpop.f32.mrf.mxu0  ;;  %v401_v63 = vadd.f32 %v400_v43, %v295_v42 }
  0xe9   : > { %v1365_v45 = vpop.f32.mrf.mxu1 }
  0xea   : > { %v308_v46 = vpop.f32.mrf.mxu0  ;;  %v422_v4 = vadd.f32 %v1365_v45, %v1355_v44 }
  0xeb   : > { %v413_v47 = vpop.f32.mrf.mxu1 }
  0xec   : > { %v1356_v48 = vpop.f32.mrf.mxu0  ;;  %v414_v9 = vadd.f32 %v413_v47, %v308_v46 }
  0xed   : > { %v1366_v49 = vpop.f32.mrf.mxu1 }
  0xee   : > { %v311_v50 = vpop.f32.mrf.mxu0  ;;  %v425_v16 = vadd.f32 %v1366_v49, %v1356_v48 }
  0xef   : > { %v416_v52 = vpop.f32.mrf.mxu1 }
  0xf0   : > { %v1371_v53 = vpop.f32.mrf.mxu0  ;;  %v417_v24 = vadd.f32 %v416_v52, %v311_v50 }
  0xf1   : > { %v551_v55 = vadd.f32 %v1371_v53, %v406_v51  ;;  %v1381_v56 = vpop.f32.mrf.mxu1 }
  0xf2   : > { %v518_v58 = vpop.f32.mrf.mxu0 }
  0xf3   : > { %v549_v60 = vadd.f32 %v518_v58, %v398_v54  ;;  %v724_v61 = vpop.f32.mrf.mxu1  ;;  %v566_v0 = vadd.f32 %v1797_v57, %v551_v55 }
  0xf4   : > { %v1372_v62 = vpop.f32.mrf.mxu0 }
  0xf5   : > { %v552_v1 = vadd.f32 %v1372_v62, %v409_v59  ;;  %v1382_v2 = vpop.f32.mrf.mxu1  ;;  %v564_v5 = vadd.f32 %v1797_v57, %v549_v60  ;;  %v574_v11 = vmax.f32 %v566_v0, 0.0 }
  0xf6   : > { %v521_v3 = vpop.f32.mrf.mxu0 }
  0xf7   : > { %v567_v6 = vadd.f32 %v1797_v57, %v552_v1  ;;  %v550_v7 = vadd.f32 %v521_v3, %v401_v63  ;;  %v727_v8 = vpop.f32.mrf.mxu1  ;;  %v572_v18 = vmax.f32 %v564_v5, 0.0 }
  0xf8   : > { %v1375_v10 = vpop.f32.mrf.mxu0 }
  0xf9   : > { %v575_v12 = vmax.f32 %v567_v6, 0.0  ;;  %v565_v13 = vadd.f32 %v1797_v57, %v550_v7  ;;  %v555_v14 = vadd.f32 %v1375_v10, %v422_v4  ;;  %v1385_v15 = vpop.f32.mrf.mxu1 }
  0xfa   : > { %v534_v17 = vpop.f32.mrf.mxu0 }
  0xfb   : > { %v1278_v19 = vpack.c.bf16 %v575_v12, %v574_v11  ;;  %v573_v20 = vmax.f32 %v565_v13, 0.0  ;;  %v553_v21 = vadd.f32 %v534_v17, %v414_v9  ;;  %v740_v22 = vpop.f32.mrf.mxu1  ;;  %v570_v26 = vadd.f32 %v1797_v57, %v555_v14 }
  0xfc   : > { %v1376_v23 = vpop.f32.mrf.mxu0 }
  0xfd   : > { %1310 = vst [vmem:[%s1806_s6 + $0x8] sm:$0xff] %v1278_v19   ;;  %v1273_v25 = vpack.c.bf16 %v573_v20, %v572_v18  ;;  %v556_v27 = vadd.f32 %v1376_v23, %v425_v16  ;;  %v1386_v28 = vpop.f32.mrf.mxu1  ;;  %v568_v29 = vadd.f32 %v1797_v57, %v553_v21  ;;  %v578_v35 = vmax.f32 %v570_v26, 0.0 }
  0xfe   : > { %v537_v30 = vpop.f32.mrf.mxu0 }
  0xff   : > { %1274 = vst [vmem:[%s1806_s6] sm:$0xff] %v1273_v25   ;;  %v571_v31 = vadd.f32 %v1797_v57, %v556_v27  ;;  %v554_v32 = vadd.f32 %v537_v30, %v417_v24  ;;  %v743_v33 = vpop.f32.mrf.mxu1  ;;  %v576_v40 = vmax.f32 %v568_v29, 0.0 }
 0x100   : > { %v1391_v34 = vpop.f32.mrf.mxu0 }
 0x101   : > { %v579_v36 = vmax.f32 %v571_v31, 0.0  ;;  %v569_v37 = vadd.f32 %v1797_v57, %v554_v32  ;;  %v838_v38 = vadd.f32 %v1391_v34, %v1381_v56  ;;  %v1401_v39 = vpop.f32.mrf.mxu1 }
 0x102   : > { %v829_v41 = vpop.f32.mrf.mxu0 }
 0x103   : > { %v1288_v42 = vpack.c.bf16 %v579_v36, %v578_v35  ;;  %v577_v43 = vmax.f32 %v569_v37, 0.0  ;;  %v982_v44 = vadd.f32 %v1401_v39, %v838_v38  ;;  %v830_v45 = vadd.f32 %v829_v41, %v724_v61  ;;  %v949_v46 = vpop.f32.mrf.mxu1 }
 0x104   : > { %v1392_v47 = vpop.f32.mrf.mxu0 }
 0x105   : > { %1312 = vst [vmem:[%s1806_s6 + $0x18] sm:$0xff] %v1288_v42   ;;  %v1283_v48 = vpack.c.bf16 %v577_v43, %v576_v40  ;;  %v980_v49 = vadd.f32 %v949_v46, %v830_v45  ;;  %v841_v50 = vadd.f32 %v1392_v47, %v1382_v2  ;;  %v1402_v51 = vpop.f32.mrf.mxu1  ;;  %v997_v53 = vadd.f32 %v1797_v57, %v982_v44 }
 0x106   : > { %v832_v52 = vpop.f32.mrf.mxu0 }
 0x107   : > { %1311 = vst [vmem:[%s1806_s6 + $0x10] sm:$0xff] %v1283_v48   ;;  %v983_v54 = vadd.f32 %v1402_v51, %v841_v50  ;;  %v833_v55 = vadd.f32 %v832_v52, %v727_v8  ;;  %v952_v56 = vpop.f32.mrf.mxu1  ;;  %v995_v59 = vadd.f32 %v1797_v57, %v980_v49  ;;  %v1005_v1 = vmax.f32 %v997_v53, 0.0 }
 0x108   : > { %v1395_v58 = vpop.f32.mrf.mxu0 }
 0x109   : > { %v998_v60 = vadd.f32 %v1797_v57, %v983_v54  ;;  %v981_v61 = vadd.f32 %v952_v56, %v833_v55  ;;  %v854_v62 = vadd.f32 %v1395_v58, %v1385_v15  ;;  %v1405_v63 = vpop.f32.mrf.mxu1  ;;  %v1003_v8 = vmax.f32 %v995_v59, 0.0 }
 0x10a   : > { %v845_v0 = vpop.f32.mrf.mxu0 }
 0x10b   : > { %v1006_v2 = vmax.f32 %v998_v60, 0.0  ;;  %v996_v3 = vadd.f32 %v1797_v57, %v981_v61  ;;  %v846_v4 = vadd.f32 %v845_v0, %v740_v22  ;;  %v965_v5 = vpop.f32.mrf.mxu1  ;;  %v986_v6 = vadd.f32 %v1405_v63, %v854_v62 }
 0x10c   : > { %v1396_v7 = vpop.f32.mrf.mxu0 }
 0x10d   : > { %v1298_v9 = vpack.c.bf16 %v1006_v2, %v1005_v1  ;;  %v1004_v10 = vmax.f32 %v996_v3, 0.0  ;;  %v984_v11 = vadd.f32 %v965_v5, %v846_v4  ;;  %v1406_v12 = vpop.f32.mrf.mxu1  ;;  %v857_v13 = vadd.f32 %v1396_v7, %v1386_v28 }
 0x10e   : > { %v848_v14 = vpop.f32.mrf.mxu0  ;;  %v1001_v17 = vadd.f32 %v1797_v57, %v986_v6 }
 0x10f   : > { %1314 = vst [vmem:[%s1806_s6 + $0x28] sm:$0xff] %v1298_v9   ;;  %v1293_v15 = vpack.c.bf16 %v1004_v10, %v1003_v8  ;;  %v849_v16 = vadd.f32 %v848_v14, %v743_v33  ;;  %v987_v18 = vadd.f32 %v1406_v12, %v857_v13  ;;  %v968_v19 = vpop.f32.mrf.mxu1  ;;  %v999_v20 = vadd.f32 %v1797_v57, %v984_v11 }
 0x110   : > { %v1009_v24 = vmax.f32 %v1001_v17, 0.0 }
 0x111   : > { %1313 = vst [vmem:[%s1806_s6 + $0x20] sm:$0xff] %v1293_v15   ;;  %v985_v21 = vadd.f32 %v968_v19, %v849_v16  ;;  %v1002_v22 = vadd.f32 %v1797_v57, %v987_v18  ;;  %v1007_v26 = vmax.f32 %v999_v20, 0.0 }
 0x113   : > { %v1000_v23 = vadd.f32 %v1797_v57, %v985_v21  ;;  %v1010_v25 = vmax.f32 %v1002_v22, 0.0 }
 0x115   : > { %v1008_v27 = vmax.f32 %v1000_v23, 0.0  ;;  %v1308_v28 = vpack.c.bf16 %v1010_v25, %v1009_v24 }
 0x117   : > { %v1303_v29 = vpack.c.bf16 %v1008_v27, %v1007_v26  ;;  %1316 = vst [vmem:[%s1806_s6 + $0x38] sm:$0xff] %v1308_v28  }
 0x119   : > { %1315 = vst [vmem:[%s1806_s6 + $0x30] sm:$0xff] %v1303_v29  }
 0x11a   : > { %1531 = shalt.err (!%p1528_p6)
}
 0x11b   : > { %s1532_s28 = scalar_lea.hbm %s1832_s21, 1024  ;;  %s1536_s6 = scalar_lea.hbm %s1894_s3, 6144 }
 0x11c   : > { %p1533_p7 = scmp.ne.s32.totalorder %s1832_s21, %s1532_s28  ;;  %p1537_p11 = scmp.lt.s32.totalorder %s1832_s21, %s1894_s3 }
 0x11d   : > { %p1538_p12 = scmp.lt.s32.totalorder %s1536_s6, %s1532_s28 }
 0x11e   : > { %p1534_p9 = pnand %p1533_p7, %p1686_p3 }
 0x11f   : > { %p1539_p13 = por %p1538_p12, %p1537_p11 }
 0x120   : > { %p1535_p10 = pneg %p1534_p9 }
 0x122   : > { %p1540_p0 = pnand %p1539_p13, %p1535_p10 }
 0x124   : > { %1543 = shalt.err (!%p1540_p0)
}
 0x125   : > { %s1613_s10 = smov 64   ;;  %s1614_s15 = smov 4  }
 0x126   : > { %1415 = dma.vmem_to_hbm [thread:$0]  (%p1686_p3), %s1834_s16, 1024, %s1832_s21, %s1840_s4, %s1613_s10, %s1613_s10, %s1614_s15  }
 0x127 PF: > { %p1421_p1 = scmp.ge.s32.totalorder %s1610_s19, 2  ;;  %s1082_s11 = sand.u32 1, %s1582_s12  }
 0x128   : > { %s1083_s27 = scalar_lea.sflag [#allocation3], %s1082_s11 }
 0x129   : > { %p1418_p2 = pnand %p1421_p1, %p1695_p8 }
 0x12b   : > { %p1419_p4 = pneg %p1418_p2 }
 0x12d   : > { %1577 = dma.done.wait (%p1419_p4), %s1083_s27, 1024  }
 0x12e   : > { %1579 = vsyncadd (%p1419_p4), %s1083_s27, 4294966272  ;;  %s16_s19 = sadd.s32 1, %s1610_s19   ;;  %s1899_s25 = sld [smem:[#allocation5_spill]] }
 0x12f   : > { %p13_p5 = scmp.ge.s32.totalorder %s16_s19, 8   ;;  %s1900_s12 = smov %s1586_s13 }
 0x130   : > { %s1901_s13 = smov %s1590_s14  ;;  %s1902_s14 = smov %s1704_s30 }
 0x131   : > { %s1903_s15 = smov %s1602_s17  ;;  %s1904_s16 = smov %s1606_s18 }
 0x132   : > { %s1905_s17 = smov %s1908_s22  ;;  %15 = sbr.rel (!%p13_p5) target bundleno = 5 (0x5), region = 75 }
 0x134   : > { %s1906_s18 = smov %s1899_s25 }
 0x137   :  { %1088 = vsyncpa [#allocation3], 1 }
 0x138   :  { %1090 = vsyncpa [#allocation3 + $0x1], 1 }

</bundles_post_ra>
